<compile_context>
chip_gen: v5e
topology: v5e:2x2
jax: 0.10.0
libtpu: 0.0.40
codegen_flags: <defaults>
</compile_context>

<pallas_src>
import functools

import jax
import jax.numpy as jnp
from jax.experimental import pallas as pl
from jax.experimental.pallas import tpu as pltpu


def _round_up(x, m):
    return ((x + m - 1) // m) * m


def _actor_kernel(max_action,
                  s_ref,
                  w1_ref, b1_ref,
                  w2_ref, b2_ref,
                  w3_ref, b3_ref,
                  w4_ref, b4_ref,
                  o_ref):
    # Hot path: four MXU matmuls (bf16 operands, f32 accumulation) + VPU/EUP
    # elementwise (bias add, ReLU, tanh, scale).
    x = s_ref[...]  # bf16 [TM, S_pad]

    a = jnp.dot(x, w1_ref[...], preferred_element_type=jnp.float32) + b1_ref[...]
    a = jnp.maximum(a, 0.0).astype(jnp.bfloat16)

    a = jnp.dot(a, w2_ref[...], preferred_element_type=jnp.float32) + b2_ref[...]
    a = jnp.maximum(a, 0.0).astype(jnp.bfloat16)

    a = jnp.dot(a, w3_ref[...], preferred_element_type=jnp.float32) + b3_ref[...]
    a = jnp.maximum(a, 0.0).astype(jnp.bfloat16)

    a = jnp.dot(a, w4_ref[...], preferred_element_type=jnp.float32) + b4_ref[...]
    o_ref[...] = (max_action * jnp.tanh(a)).astype(o_ref.dtype)


def a2pr_actor_forward(state, params, max_action=1.0, tm=256):
    """state: [B, state_dim] float32. params: dict of (w_i, b_i) with w_i as [in, out]."""
    B, state_dim = state.shape
    hidden = params["w1"].shape[1]
    action_dim = params["w4"].shape[1]

    # Lane-dense padding of the feature dims (last dim -> multiple of 128).
    s_pad = _round_up(state_dim, 128)
    a_pad = _round_up(action_dim, 128)

    # Batch tile: TM rows per grid step. For small batches use a single block
    # (rounded to 16 for clean bf16 sublane packing); otherwise pad B up to a
    # multiple of TM. Padded rows are garbage-in / sliced-off-out.
    if B <= tm:
        tm = max(_round_up(B, 16), 16)
    b_pad = _round_up(B, tm)
    grid = (b_pad // tm,)

    # Pad + cast once in the wrapper. Weights in bf16 (halves weight DMA,
    # bf16-native MXU on v5e/v6e/v7x); biases stay f32 (added post-accumulation).
    x = jnp.pad(state, ((0, b_pad - B), (0, s_pad - state_dim))).astype(jnp.bfloat16)
    w1 = jnp.pad(params["w1"], ((0, s_pad - state_dim), (0, 0))).astype(jnp.bfloat16)
    w2 = params["w2"].astype(jnp.bfloat16)
    w3 = params["w3"].astype(jnp.bfloat16)
    w4 = jnp.pad(params["w4"], ((0, 0), (0, a_pad - action_dim))).astype(jnp.bfloat16)
    b1 = params["b1"].astype(jnp.float32)
    b2 = params["b2"].astype(jnp.float32)
    b3 = params["b3"].astype(jnp.float32)
    b4 = jnp.pad(params["b4"], ((0, 0), (0, a_pad - action_dim))).astype(jnp.float32)

    # Weights/biases: full-array blocks, constant index_map -> VMEM-resident
    # across batch tiles. State/output: tiled over the batch axis.
    resident = lambda arr: pl.BlockSpec(arr.shape, lambda i: (0, 0))
    in_specs = [
        pl.BlockSpec((tm, s_pad), lambda i: (i, 0)),   # state tile
        resident(w1), resident(b1),
        resident(w2), resident(b2),
        resident(w3), resident(b3),
        resident(w4), resident(b4),
    ]
    out_specs = pl.BlockSpec((tm, a_pad), lambda i: (i, 0))

    kernel = functools.partial(_actor_kernel, float(max_action))
    # TODO(synk): if max_action varies at runtime, pass it via an SMEM scalar
    # instead of baking it in (avoids recompiles); it is a fixed hyperparameter
    # in the original module, so a Python constant is fine here.

    out_padded = pl.pallas_call(
        kernel,
        out_shape=jax.ShapeDtypeStruct((b_pad, a_pad), jnp.float32),
        grid=grid,
        in_specs=in_specs,
        out_specs=out_specs,
        compiler_params=pltpu.CompilerParams(
            dimension_semantics=("parallel",)),  # 2x on v7x dual-TC; no-op elsewhere
    )(x, w1, b1, w2, b2, w3, b3, w4, b4)

    return out_padded[:B, :action_dim]


def init_a2pr_actor_params(key, state_dim, action_dim):
    """Deterministic init mimicking PyTorch nn.Linear default (uniform +-1/sqrt(fan_in))."""
    dims = [(state_dim, 256), (256, 256), (256, 256), (256, action_dim)]
    params = {}
    for i, (fan_in, fan_out) in enumerate(dims, start=1):
        key, kw, kb = jax.random.split(key, 3)
        bound = 1.0 / jnp.sqrt(float(fan_in))
        # Stored as [in, out]; biases kept 2D (1, out) for clean broadcasting in-kernel.
        params[f"w{i}"] = jax.random.uniform(
            kw, (fan_in, fan_out), jnp.float32, minval=-bound, maxval=bound)
        params[f"b{i}"] = jax.random.uniform(
            kb, (1, fan_out), jnp.float32, minval=-bound, maxval=bound)
    return params


def a2pr_actor_reference(state, params, max_action=1.0):
    """Pure-JAX f32 reference for correctness checking."""
    a = jnp.maximum(state @ params["w1"] + params["b1"], 0.0)
    a = jnp.maximum(a @ params["w2"] + params["b2"], 0.0)
    a = jnp.maximum(a @ params["w3"] + params["b3"], 0.0)
    return max_action * jnp.tanh(a @ params["w4"] + params["b4"])


if __name__ == "__main__":
    key = jax.random.PRNGKey(0)
    k_params, k_state = jax.random.split(key)

    batch = 8
    state_dim = 16
    action_dim = 4
    max_action = 1.0

    params = init_a2pr_actor_params(k_params, state_dim, action_dim)
    state = jax.random.normal(k_state, (batch, state_dim), jnp.float32)

    out = a2pr_actor_forward(state, params, max_action=max_action)
    out = jax.block_until_ready(out)

    ref = a2pr_actor_reference(state, params, max_action=max_action)
    assert out.shape == (batch, action_dim)
    # bf16 MXU operands (f32 accumulation) -> relax tolerance vs. the f32 reference.
    assert jnp.allclose(out, ref, atol=3e-2, rtol=3e-2), float(jnp.max(jnp.abs(out - ref)))

    # Also exercise the multi-tile grid path (B > TM) to validate pipelining.
    big_state = jax.random.normal(k_state, (640, state_dim), jnp.float32)
    big_out = jax.block_until_ready(
        a2pr_actor_forward(big_state, params, max_action=max_action, tm=256))
    big_ref = a2pr_actor_reference(big_state, params, max_action=max_action)
    assert big_out.shape == (640, action_dim)
    assert jnp.allclose(big_out, big_ref, atol=3e-2, rtol=3e-2)

    print("KERNEL_OK")
</pallas_src>

<mosaic_0001>
module attributes {stable_mosaic.version = 11 : i64} {
  func.func @_actor_kernel(%arg0: i32, %arg1: memref<16x128xbf16, #tpu.memory_space<vmem>>, %arg2: memref<128x256xbf16, #tpu.memory_space<vmem>>, %arg3: memref<1x256xf32, #tpu.memory_space<vmem>>, %arg4: memref<256x256xbf16, #tpu.memory_space<vmem>>, %arg5: memref<1x256xf32, #tpu.memory_space<vmem>>, %arg6: memref<256x256xbf16, #tpu.memory_space<vmem>>, %arg7: memref<1x256xf32, #tpu.memory_space<vmem>>, %arg8: memref<256x128xbf16, #tpu.memory_space<vmem>>, %arg9: memref<1x128xf32, #tpu.memory_space<vmem>>, %arg10: memref<16x128xf32, #tpu.memory_space<vmem>>) attributes {dimension_semantics = [#tpu.dimension_semantics<parallel>], iteration_bounds = array<i64: 1>, scalar_prefetch = 0 : i64, scratch_operands = 0 : i64, tpu.core_type = #tpu.core_type<tc>, window_params = [{transform_indices = @transform_0, window_bounds = array<i64: 16, 128>}, {pipeline_mode = #tpu.pipeline_mode<synchronous>, transform_indices = @transform_1, window_bounds = array<i64: 128, 256>}, {pipeline_mode = #tpu.pipeline_mode<synchronous>, transform_indices = @transform_2, window_bounds = array<i64: 1, 256>}, {pipeline_mode = #tpu.pipeline_mode<synchronous>, transform_indices = @transform_3, window_bounds = array<i64: 256, 256>}, {pipeline_mode = #tpu.pipeline_mode<synchronous>, transform_indices = @transform_4, window_bounds = array<i64: 1, 256>}, {pipeline_mode = #tpu.pipeline_mode<synchronous>, transform_indices = @transform_5, window_bounds = array<i64: 256, 256>}, {pipeline_mode = #tpu.pipeline_mode<synchronous>, transform_indices = @transform_6, window_bounds = array<i64: 1, 256>}, {pipeline_mode = #tpu.pipeline_mode<synchronous>, transform_indices = @transform_7, window_bounds = array<i64: 256, 128>}, {pipeline_mode = #tpu.pipeline_mode<synchronous>, transform_indices = @transform_8, window_bounds = array<i64: 1, 128>}, {transform_indices = @transform_9, window_bounds = array<i64: 16, 128>}]} {
    %c0 = arith.constant 0 : index
    %c0_0 = arith.constant 0 : index
    %0 = vector.load %arg1[%c0, %c0_0] : memref<16x128xbf16, #tpu.memory_space<vmem>>, vector<16x128xbf16>
    %c0_1 = arith.constant 0 : index
    %c0_2 = arith.constant 0 : index
    %1 = vector.load %arg2[%c0_1, %c0_2] : memref<128x256xbf16, #tpu.memory_space<vmem>>, vector<128x256xbf16>
    %cst = arith.constant dense<0.000000e+00> : vector<16x256xf32>
    %2 = tpu.matmul %0, %1, %cst {dimension_numbers = #tpu.dot_dimension_numbers<[1], [0], [0], [1], [0, 0, 1, 1], [], []>} : vector<16x128xbf16>, vector<128x256xbf16>, vector<16x256xf32> -> vector<16x256xf32>
    %c0_3 = arith.constant 0 : index
    %c0_4 = arith.constant 0 : index
    %3 = vector.load %arg3[%c0_3, %c0_4] : memref<1x256xf32, #tpu.memory_space<vmem>>, vector<1x256xf32>
    %4 = vector.broadcast %3 : vector<1x256xf32> to vector<16x256xf32>
    %5 = arith.addf %2, %4 : vector<16x256xf32>
    %cst_5 = arith.constant 0.000000e+00 : f32
    %6 = vector.broadcast %cst_5 : f32 to vector<16x256xf32>
    %7 = arith.maximumf %5, %6 : vector<16x256xf32>
    %8 = arith.truncf %7 : vector<16x256xf32> to vector<16x256xbf16>
    %c0_6 = arith.constant 0 : index
    %c0_7 = arith.constant 0 : index
    %9 = vector.load %arg4[%c0_6, %c0_7] : memref<256x256xbf16, #tpu.memory_space<vmem>>, vector<256x256xbf16>
    %cst_8 = arith.constant dense<0.000000e+00> : vector<16x256xf32>
    %10 = tpu.matmul %8, %9, %cst_8 {dimension_numbers = #tpu.dot_dimension_numbers<[1], [0], [0], [1], [0, 0, 1, 1], [], []>} : vector<16x256xbf16>, vector<256x256xbf16>, vector<16x256xf32> -> vector<16x256xf32>
    %c0_9 = arith.constant 0 : index
    %c0_10 = arith.constant 0 : index
    %11 = vector.load %arg5[%c0_9, %c0_10] : memref<1x256xf32, #tpu.memory_space<vmem>>, vector<1x256xf32>
    %12 = vector.broadcast %11 : vector<1x256xf32> to vector<16x256xf32>
    %13 = arith.addf %10, %12 : vector<16x256xf32>
    %cst_11 = arith.constant 0.000000e+00 : f32
    %14 = vector.broadcast %cst_11 : f32 to vector<16x256xf32>
    %15 = arith.maximumf %13, %14 : vector<16x256xf32>
    %16 = arith.truncf %15 : vector<16x256xf32> to vector<16x256xbf16>
    %c0_12 = arith.constant 0 : index
    %c0_13 = arith.constant 0 : index
    %17 = vector.load %arg6[%c0_12, %c0_13] : memref<256x256xbf16, #tpu.memory_space<vmem>>, vector<256x256xbf16>
    %cst_14 = arith.constant dense<0.000000e+00> : vector<16x256xf32>
    %18 = tpu.matmul %16, %17, %cst_14 {dimension_numbers = #tpu.dot_dimension_numbers<[1], [0], [0], [1], [0, 0, 1, 1], [], []>} : vector<16x256xbf16>, vector<256x256xbf16>, vector<16x256xf32> -> vector<16x256xf32>
    %c0_15 = arith.constant 0 : index
    %c0_16 = arith.constant 0 : index
    %19 = vector.load %arg7[%c0_15, %c0_16] : memref<1x256xf32, #tpu.memory_space<vmem>>, vector<1x256xf32>
    %20 = vector.broadcast %19 : vector<1x256xf32> to vector<16x256xf32>
    %21 = arith.addf %18, %20 : vector<16x256xf32>
    %cst_17 = arith.constant 0.000000e+00 : f32
    %22 = vector.broadcast %cst_17 : f32 to vector<16x256xf32>
    %23 = arith.maximumf %21, %22 : vector<16x256xf32>
    %24 = arith.truncf %23 : vector<16x256xf32> to vector<16x256xbf16>
    %c0_18 = arith.constant 0 : index
    %c0_19 = arith.constant 0 : index
    %25 = vector.load %arg8[%c0_18, %c0_19] : memref<256x128xbf16, #tpu.memory_space<vmem>>, vector<256x128xbf16>
    %cst_20 = arith.constant dense<0.000000e+00> : vector<16x128xf32>
    %26 = tpu.matmul %24, %25, %cst_20 {dimension_numbers = #tpu.dot_dimension_numbers<[1], [0], [0], [1], [0, 0, 1, 1], [], []>} : vector<16x256xbf16>, vector<256x128xbf16>, vector<16x128xf32> -> vector<16x128xf32>
    %c0_21 = arith.constant 0 : index
    %c0_22 = arith.constant 0 : index
    %27 = vector.load %arg9[%c0_21, %c0_22] : memref<1x128xf32, #tpu.memory_space<vmem>>, vector<1x128xf32>
    %28 = vector.broadcast %27 : vector<1x128xf32> to vector<16x128xf32>
    %29 = arith.addf %26, %28 : vector<16x128xf32>
    %30 = math.tanh %29 : vector<16x128xf32>
    %cst_23 = arith.constant 1.000000e+00 : f32
    %31 = vector.broadcast %cst_23 : f32 to vector<16x128xf32>
    %32 = arith.mulf %31, %30 : vector<16x128xf32>
    %c0_24 = arith.constant 0 : index
    %c0_25 = arith.constant 0 : index
    %33 = vector.load %arg10[%c0_24, %c0_25] : memref<16x128xf32, #tpu.memory_space<vmem>>, vector<16x128xf32>
    tpu.vector_store %arg10[%c0_24, %c0_25], %32 {strides = array<i32>} : memref<16x128xf32, #tpu.memory_space<vmem>>, vector<16x128xf32>,
    return
  }
  func.func @transform_0(%arg0: i32) -> (i32, i32) {
    %c0_i32 = arith.constant 0 : i32
    %c0_i32_0 = arith.constant 0 : i32
    return %arg0, %c0_i32 : i32, i32
  }
  func.func @transform_1(%arg0: i32) -> (i32, i32) {
    %c0_i32 = arith.constant 0 : i32
    %c0_i32_0 = arith.constant 0 : i32
    %c0_i32_1 = arith.constant 0 : i32
    return %c0_i32, %c0_i32_0 : i32, i32
  }
  func.func @transform_2(%arg0: i32) -> (i32, i32) {
    %c0_i32 = arith.constant 0 : i32
    %c0_i32_0 = arith.constant 0 : i32
    %c0_i32_1 = arith.constant 0 : i32
    return %c0_i32, %c0_i32_0 : i32, i32
  }
  func.func @transform_3(%arg0: i32) -> (i32, i32) {
    %c0_i32 = arith.constant 0 : i32
    %c0_i32_0 = arith.constant 0 : i32
    %c0_i32_1 = arith.constant 0 : i32
    return %c0_i32, %c0_i32_0 : i32, i32
  }
  func.func @transform_4(%arg0: i32) -> (i32, i32) {
    %c0_i32 = arith.constant 0 : i32
    %c0_i32_0 = arith.constant 0 : i32
    %c0_i32_1 = arith.constant 0 : i32
    return %c0_i32, %c0_i32_0 : i32, i32
  }
  func.func @transform_5(%arg0: i32) -> (i32, i32) {
    %c0_i32 = arith.constant 0 : i32
    %c0_i32_0 = arith.constant 0 : i32
    %c0_i32_1 = arith.constant 0 : i32
    return %c0_i32, %c0_i32_0 : i32, i32
  }
  func.func @transform_6(%arg0: i32) -> (i32, i32) {
    %c0_i32 = arith.constant 0 : i32
    %c0_i32_0 = arith.constant 0 : i32
    %c0_i32_1 = arith.constant 0 : i32
    return %c0_i32, %c0_i32_0 : i32, i32
  }
  func.func @transform_7(%arg0: i32) -> (i32, i32) {
    %c0_i32 = arith.constant 0 : i32
    %c0_i32_0 = arith.constant 0 : i32
    %c0_i32_1 = arith.constant 0 : i32
    return %c0_i32, %c0_i32_0 : i32, i32
  }
  func.func @transform_8(%arg0: i32) -> (i32, i32) {
    %c0_i32 = arith.constant 0 : i32
    %c0_i32_0 = arith.constant 0 : i32
    %c0_i32_1 = arith.constant 0 : i32
    return %c0_i32, %c0_i32_0 : i32, i32
  }
  func.func @transform_9(%arg0: i32) -> (i32, i32) {
    %c0_i32 = arith.constant 0 : i32
    %c0_i32_0 = arith.constant 0 : i32
    return %arg0, %c0_i32 : i32, i32
  }
}

</mosaic_0001>

<bundles_post_ra>
// kernel: tpu_custom_call.1
= control target key start
LH: loop header
LB: loop body
LE: loop exit
PB: predicated region body
PF: predicated region fallthrough
CT: control target
= control target key end

     0   :  { %14 = vsyncpa [#allocation3], 0  ;;  %s1757_s0 = inlined_call_operand.hbm [shape: bf16[16,128], index: 0, kind: input, shape index: {}]   ;;  %s1758_s1 = inlined_call_operand.hbm [shape: bf16[128,256], index: 1, kind: input, shape index: {}]   ;;  %s1759_s2 = inlined_call_operand.hbm [shape: f32[1,256], index: 2, kind: input, shape index: {}]   ;;  %s1760_s3 = inlined_call_operand.hbm [shape: bf16[256,256], index: 3, kind: input, shape index: {}]   ;;  %s1761_s4 = inlined_call_operand.vmem [shape: f32[1,256], index: 4, kind: input, shape index: {}]   ;;  %s1762_s5 = inlined_call_operand.hbm [shape: bf16[256,256], index: 5, kind: input, shape index: {}]   ;;  %s1763_s6 = inlined_call_operand.vmem [shape: f32[1,256], index: 6, kind: input, shape index: {}]   ;;  %s1764_s7 = inlined_call_operand.hbm [shape: bf16[256,128], index: 7, kind: input, shape index: {}]   ;;  %s1765_s8 = inlined_call_operand.vmem [shape: f32[1,128], index: 8, kind: input, shape index: {}]   ;;  %s1766_s9 = inlined_call_operand.hbm [shape: f32[16,128], index: 9, kind: output, shape index: {}]  }
   0x1   :  { %15 = vsyncpa [#allocation6], 0 }
   0x2   :  { %16 = vsyncpa [#allocation9], 0 }
   0x3   :  { %17 = vsyncpa [#allocation12], 0  ;;  %s36_s11 = sshll.u32 %s1758_s1, 4  ;;  %s37_s11 = int_to_ptr.hbm [resolvable:$true] %s36_s11 }
   0x4   :  { %18 = vsyncpa [#allocation4], 0  ;;  %s1654_s12 = smov [#allocation5]   ;;  %s60_s16 = sshll.u32 %s1760_s3, 4  ;;  %s61_s16 = int_to_ptr.hbm [resolvable:$true] %s60_s16 }
   0x5   :  { %s38_s13 = sshll.u32 %s1654_s12, 4  ;;  %s1655_s17 = smov 128   ;;  %s39_s13 = int_to_ptr.vmem [resolvable:$true] %s38_s13 }
   0x6   :  { %s1656_s18 = smov 8   ;;  %s1657_s19 = smov [#allocation8]  }
   0x7   :  { %44 = dma.hbm_to_vmem [thread:$0]  %s37_s11, 2048, %s39_s13, [#allocation6], %s1655_s17, %s1655_s17, %s1656_s18  }
   0x8   :  { %s62_s20 = sshll.u32 %s1657_s19, 4  ;;  %s23_s22 = sshll.u32 %s1757_s0, 4  ;;  %s63_s20 = int_to_ptr.vmem [resolvable:$true] %s62_s20  ;;  %s24_s22 = int_to_ptr.hbm [resolvable:$true] %s23_s22 }
   0x9   :  { %68 = dma.hbm_to_vmem [thread:$0]  %s61_s16, 4096, %s63_s20, [#allocation9], %s1655_s17, %s1655_s17, %s1656_s18  }
   0xa   :  { %s1658_s3 = smov [#allocation2]   ;;  %s50_s26 = sshll.u32 %s1759_s2, 4  ;;  %s51_s26 = int_to_ptr.hbm [resolvable:$true] %s50_s26 }
   0xb   :  { %s25_s23 = sshll.u32 %s1658_s3, 4  ;;  %s1659_s27 = smov 64   ;;  %s26_s23 = int_to_ptr.vmem [resolvable:$true] %s25_s23 }
   0xc   :  { %s1660_s28 = smov 4   ;;  %s1661_s29 = smov [#allocation7]  }
   0xd   :  { %31 = dma.hbm_to_vmem [thread:$0]  %s24_s22, 128, %s26_s23, [#allocation3], %s1659_s27, %s1659_s27, %s1660_s28  }
   0xe   :  { %s52_s30 = sshll.u32 %s1661_s29, 4  ;;  %s75_s11 = sshll.u32 %s1762_s5, 4  ;;  %s53_s30 = int_to_ptr.vmem [resolvable:$true] %s52_s30  ;;  %s76_s11 = int_to_ptr.hbm [resolvable:$true] %s75_s11 }
   0xf   :  { %55 = dma.hbm_to_vmem [thread:$0]  %s51_s26, 32, %s53_s30, [#allocation6]  }
  0x10   :  { %s90_s14 = sshll.u32 %s1764_s7, 4  ;;  %s1662_s15 = smov [#allocation10]   ;;  %s91_s14 = int_to_ptr.hbm [resolvable:$true] %s90_s14 }
  0x11   :  { %s77_s16 = sshll.u32 %s1662_s15, 4  ;;  %s1663_s2 = smov [#allocation11]   ;;  %s78_s16 = int_to_ptr.vmem [resolvable:$true] %s77_s16 }
  0x12   :  { %83 = dma.hbm_to_vmem [thread:$0]  %s76_s11, 4096, %s78_s16, [#allocation9], %s1655_s17, %s1655_s17, %s1656_s18  }
  0x13   :  { %s92_s19 = sshll.u32 %s1663_s2, 4  ;;  %s93_s19 = int_to_ptr.vmem [resolvable:$true] %s92_s19 }
  0x14   :  { %98 = dma.hbm_to_vmem [thread:$0]  %s91_s14, 2048, %s93_s19, [#allocation12], %s1659_s27, %s1659_s27, %s1660_s28  }
  0x15   :  { %1644 = dma.done.wait [#allocation3], 128  }
  0x16   :  { %1645 = vsyncadd [#allocation3], 4294967168 }
  0x17   :  { %1646 = dma.done.wait [#allocation6], 2080  }
  0x18   :  { %1647 = vsyncadd [#allocation6], 4294965216 }
  0x19   :  { %1648 = dma.done.wait [#allocation9], 8192  }
  0x1a   :  { %1649 = vsyncadd [#allocation9], 4294959104 }
  0x1b   :  { %1650 = dma.done.wait [#allocation12], 2048  }
  0x1c   :  { %1651 = vsyncadd [#allocation12], 4294965248  ;;  %v1037_v0 = vld [vmem:[#allocation5 + $0x70] sm:$0xf]  ;;  %v1379_v1 = vld [vmem:[#allocation5 + $0x74] sm:$0xf0] }
  0x1d   :  { %v1378_v2 = vld [vmem:[#allocation5 + $0x74] sm:$0xf]  ;;  %v1038_v3 = vor.u32 %v1379_v1, %v1037_v0  ;;  %v1039_v4 = vld [vmem:[#allocation5 + $0x78] sm:$0xf0]  ;;  %v1029_v5 = vld [vmem:[#allocation5 + $0x60] sm:$0xf] }
  0x1e   :  { %v1377_v6 = vld [vmem:[#allocation5 + $0x64] sm:$0xf0]  ;;  %v1042_v7 = vor.u32 %v1378_v2, %v1039_v4  ;;  %v1376_v8 = vld [vmem:[#allocation5 + $0x64] sm:$0xf]  ;;  %v1031_v9 = vld [vmem:[#allocation5 + $0x68] sm:$0xf0] }
  0x1f   :  { %235 = vmatpush.bf16.msra.mxu0 %v1038_v3  ;;  %v1030_v10 = vor.u32 %v1377_v6, %v1029_v5  ;;  %v1034_v11 = vor.u32 %v1376_v8, %v1031_v9  ;;  %v1021_v12 = vld [vmem:[#allocation5 + $0x50] sm:$0xf]  ;;  %v1375_v13 = vld [vmem:[#allocation5 + $0x54] sm:$0xf0]  ;;  %v1374_v14 = vld [vmem:[#allocation5 + $0x54] sm:$0xf] }
  0x20   :  { %249 = vmatpush.bf16.msra.mxu1 %v1042_v7  ;;  %v1023_v15 = vld [vmem:[#allocation5 + $0x58] sm:$0xf0]  ;;  %v1022_v16 = vor.u32 %v1375_v13, %v1021_v12  ;;  %v1013_v18 = vld [vmem:[#allocation5 + $0x40] sm:$0xf]  ;;  %v1373_v19 = vld [vmem:[#allocation5 + $0x44] sm:$0xf0] }
  0x21   :  { %v1026_v17 = vor.u32 %v1374_v14, %v1023_v15  ;;  %v1372_v20 = vld [vmem:[#allocation5 + $0x44] sm:$0xf]  ;;  %v1015_v21 = vld [vmem:[#allocation5 + $0x48] sm:$0xf0]  ;;  %v1014_v22 = vor.u32 %v1373_v19, %v1013_v18  ;;  %v1101_v23 = vld [vmem:[#allocation8 + $0x70] sm:$0xf] }
  0x22   :  { %v1395_v24 = vld [vmem:[#allocation8 + $0x74] sm:$0xf0]  ;;  %v1165_v25 = vld [vmem:[#allocation8 + $0xf0] sm:$0xf]  ;;  %v1018_v26 = vor.u32 %v1372_v20, %v1015_v21  ;;  %v1093_v34 = vld [vmem:[#allocation8 + $0x60] sm:$0xf] }
  0x23   :  { %236 = vmatpush.bf16.msra.mxu0 %v1030_v10  ;;  %v1005_v27 = vld [vmem:[#allocation5 + $0x30] sm:$0xf]  ;;  %v1371_v28 = vld [vmem:[#allocation5 + $0x34] sm:$0xf0]  ;;  %v1102_v29 = vor.u32 %v1395_v24, %v1101_v23  ;;  %v1370_v31 = vld [vmem:[#allocation5 + $0x34] sm:$0xf] }
  0x24   :  { %250 = vmatpush.bf16.msra.mxu1 %v1034_v11  ;;  %v1411_v30 = vld [vmem:[#allocation8 + $0xf4] sm:$0xf0]  ;;  %v1393_v35 = vld [vmem:[#allocation8 + $0x64] sm:$0xf0]  ;;  %v1157_v36 = vld [vmem:[#allocation8 + $0xe0] sm:$0xf]  ;;  %v1006_v38 = vor.u32 %v1371_v28, %v1005_v27 }
  0x25   :  { %v1007_v32 = vld [vmem:[#allocation5 + $0x38] sm:$0xf0]  ;;  %v1166_v33 = vor.u32 %v1411_v30, %v1165_v25  ;;  %467 = vmatpush.bf16.msra.mxu2 %v1102_v29  ;;  %v1409_v37 = vld [vmem:[#allocation8 + $0xe4] sm:$0xf0]  ;;  %v997_v39 = vld [vmem:[#allocation5 + $0x20] sm:$0xf]  ;;  %v1094_v41 = vor.u32 %v1393_v35, %v1093_v34 }
  0x26   :  { %v1369_v40 = vld [vmem:[#allocation5 + $0x24] sm:$0xf0]  ;;  %v1158_v42 = vor.u32 %v1409_v37, %v1157_v36  ;;  %v1010_v43 = vor.u32 %v1370_v31, %v1007_v32  ;;  %v1368_v44 = vld [vmem:[#allocation5 + $0x24] sm:$0xf]  ;;  %v1085_v45 = vld [vmem:[#allocation8 + $0x50] sm:$0xf] }
  0x27   :  { %237 = vmatpush.bf16.msra.mxu0 %v1022_v16  ;;  %481 = vmatpush.bf16.msra.mxu3 %v1166_v33  ;;  %v1391_v46 = vld [vmem:[#allocation8 + $0x54] sm:$0xf0]  ;;  %v999_v47 = vld [vmem:[#allocation5 + $0x28] sm:$0xf0]  ;;  %v1149_v48 = vld [vmem:[#allocation8 + $0xd0] sm:$0xf]  ;;  %v998_v51 = vor.u32 %v1369_v40, %v997_v39 }
  0x28   :  { %251 = vmatpush.bf16.msra.mxu1 %v1026_v17  ;;  %v1407_v49 = vld [vmem:[#allocation8 + $0xd4] sm:$0xf0]  ;;  %v1086_v50 = vor.u32 %v1391_v46, %v1085_v45  ;;  %v989_v52 = vld [vmem:[#allocation5 + $0x10] sm:$0xf]  ;;  %v1077_v54 = vld [vmem:[#allocation8 + $0x40] sm:$0xf]  ;;  %v1002_v56 = vor.u32 %v1368_v44, %v999_v47 }
  0x29   :  { %468 = vmatpush.bf16.msra.mxu2 %v1094_v41  ;;  %v1150_v53 = vor.u32 %v1407_v49, %v1149_v48  ;;  %v1389_v55 = vld [vmem:[#allocation8 + $0x44] sm:$0xf0]  ;;  %v1367_v57 = vld [vmem:[#allocation5 + $0x14] sm:$0xf0]  ;;  %v1141_v58 = vld [vmem:[#allocation8 + $0xc0] sm:$0xf] }
  0x2a   :  { %v1405_v59 = vld [vmem:[#allocation8 + $0xc4] sm:$0xf0]  ;;  %v1366_v60 = vld [vmem:[#allocation5 + $0x14] sm:$0xf]  ;;  %v991_v61 = vld [vmem:[#allocation5 + $0x18] sm:$0xf0]  ;;  %v1078_v62 = vor.u32 %v1389_v55, %v1077_v54  ;;  %v990_v63 = vor.u32 %v1367_v57, %v989_v52 }
  0x2b   :  { %238 = vmatpush.bf16.msra.mxu0 %v1014_v22  ;;  %482 = vmatpush.bf16.msra.mxu3 %v1158_v42  ;;  %v1142_v0 = vor.u32 %v1405_v59, %v1141_v58  ;;  %v994_v1 = vor.u32 %v1366_v60, %v991_v61  ;;  %v981_v2 = vld [vmem:[#allocation5] sm:$0xf]  ;;  %v1365_v3 = vld [vmem:[#allocation5 + $0x4] sm:$0xf0]  ;;  %v1364_v4 = vld [vmem:[#allocation5 + $0x4] sm:$0xf] }
  0x2c   :  { %252 = vmatpush.bf16.msra.mxu1 %v1018_v26  ;;  %v983_v5 = vld [vmem:[#allocation5 + $0x8] sm:$0xf0]  ;;  %v1394_v6 = vld [vmem:[#allocation8 + $0x74] sm:$0xf]  ;;  %v1103_v7 = vld [vmem:[#allocation8 + $0x78] sm:$0xf0]  ;;  %v982_v10 = vor.u32 %v1365_v3, %v981_v2 }
  0x2d   :  { %469 = vmatpush.bf16.msra.mxu2 %v1086_v50  ;;  %v1410_v8 = vld [vmem:[#allocation8 + $0xf4] sm:$0xf]  ;;  %v1167_v9 = vld [vmem:[#allocation8 + $0xf8] sm:$0xf0]  ;;  %v986_v11 = vor.u32 %v1364_v4, %v983_v5  ;;  %v1106_v12 = vor.u32 %v1394_v6, %v1103_v7  ;;  %v1392_v14 = vld [vmem:[#allocation8 + $0x64] sm:$0xf] }
  0x2e   :  { %v1170_v13 = vor.u32 %v1410_v8, %v1167_v9  ;;  %v1095_v15 = vld [vmem:[#allocation8 + $0x68] sm:$0xf0]  ;;  %v1363_v16 = vld [vmem:[#allocation2] sm:$0xff]  ;;  %v1408_v17 = vld [vmem:[#allocation8 + $0xe4] sm:$0xf]  ;;  %s1664_s1 = smov [#allocation13]  }
  0x2f   :  { %239 = vmatpush.bf16.msra.mxu0 %v1006_v38  ;;  %483 = vmatpush.bf16.msra.mxu3 %v1150_v53  ;;  %v1159_v18 = vld [vmem:[#allocation8 + $0xe8] sm:$0xf0]  ;;  %v1098_v19 = vor.u32 %v1392_v14, %v1095_v15  ;;  %v1390_v21 = vld [vmem:[#allocation8 + $0x54] sm:$0xf]  ;;  %v1087_v22 = vld [vmem:[#allocation8 + $0x58] sm:$0xf0] }
  0x30   :  { %253 = vmatpush.bf16.msra.mxu1 %v1010_v43  ;;  %v1162_v20 = vor.u32 %v1408_v17, %v1159_v18  ;;  %v1406_v23 = vld [vmem:[#allocation8 + $0xd4] sm:$0xf]  ;;  %v1151_v24 = vld [vmem:[#allocation8 + $0xd8] sm:$0xf0]  ;;  %v1090_v25 = vor.u32 %v1390_v21, %v1087_v22  ;;  %v1388_v27 = vld [vmem:[#allocation8 + $0x44] sm:$0xf] }
  0x31   :  { %470 = vmatpush.bf16.msra.mxu2 %v1078_v62  ;;  %v1154_v26 = vor.u32 %v1406_v23, %v1151_v24  ;;  %v1079_v28 = vld [vmem:[#allocation8 + $0x48] sm:$0xf0]  ;;  %v1404_v29 = vld [vmem:[#allocation8 + $0xc4] sm:$0xf]  ;;  %v1069_v33 = vld [vmem:[#allocation8 + $0x30] sm:$0xf] }
  0x32   :  { %v1143_v30 = vld [vmem:[#allocation8 + $0xc8] sm:$0xf0]  ;;  %v1082_v31 = vor.u32 %v1388_v27, %v1079_v28  ;;  %v1387_v34 = vld [vmem:[#allocation8 + $0x34] sm:$0xf0]  ;;  %v1133_v35 = vld [vmem:[#allocation8 + $0xb0] sm:$0xf] }
  0x33   :  { %240 = vmatpush.bf16.msra.mxu0 %v998_v51  ;;  %484 = vmatpush.bf16.msra.mxu3 %v1142_v0  ;;  %v1146_v32 = vor.u32 %v1404_v29, %v1143_v30  ;;  %v1070_v36 = vor.u32 %v1387_v34, %v1069_v33  ;;  %v1403_v37 = vld [vmem:[#allocation8 + $0xb4] sm:$0xf0]  ;;  %v1386_v38 = vld [vmem:[#allocation8 + $0x34] sm:$0xf]  ;;  %v1071_v39 = vld [vmem:[#allocation8 + $0x38] sm:$0xf0] }
  0x34   :  { %254 = vmatpush.bf16.msra.mxu1 %v1002_v56  ;;  %v1134_v40 = vor.u32 %v1403_v37, %v1133_v35  ;;  %v1074_v41 = vor.u32 %v1386_v38, %v1071_v39  ;;  %v1402_v42 = vld [vmem:[#allocation8 + $0xb4] sm:$0xf]  ;;  %v1135_v43 = vld [vmem:[#allocation8 + $0xb8] sm:$0xf0]  ;;  %v1061_v45 = vld [vmem:[#allocation8 + $0x20] sm:$0xf] }
  0x35   :  { %471 = vmatpush.bf16.msra.mxu2 %v1070_v36  ;;  %v1138_v44 = vor.u32 %v1402_v42, %v1135_v43  ;;  %v1385_v46 = vld [vmem:[#allocation8 + $0x24] sm:$0xf0]  ;;  %v1125_v48 = vld [vmem:[#allocation8 + $0xa0] sm:$0xf]  ;;  %v1384_v50 = vld [vmem:[#allocation8 + $0x24] sm:$0xf] }
  0x36   :  { %v1062_v47 = vor.u32 %v1385_v46, %v1061_v45  ;;  %v1401_v49 = vld [vmem:[#allocation8 + $0xa4] sm:$0xf0]  ;;  %v1063_v52 = vld [vmem:[#allocation8 + $0x28] sm:$0xf0]  ;;  %v1400_v53 = vld [vmem:[#allocation8 + $0xa4] sm:$0xf] }
  0x37   :  { %241 = vmatpush.bf16.msra.mxu0 %v990_v63  ;;  %485 = vmatpush.bf16.msra.mxu3 %v1134_v40  ;;  %v1126_v51 = vor.u32 %v1401_v49, %v1125_v48  ;;  %v1127_v54 = vld [vmem:[#allocation8 + $0xa8] sm:$0xf0]  ;;  %v1066_v55 = vor.u32 %v1384_v50, %v1063_v52  ;;  %v1053_v57 = vld [vmem:[#allocation8 + $0x10] sm:$0xf]  ;;  %v1383_v58 = vld [vmem:[#allocation8 + $0x14] sm:$0xf0] }
  0x38   :  { %255 = vmatpush.bf16.msra.mxu1 %v994_v1  ;;  %v1130_v56 = vor.u32 %v1400_v53, %v1127_v54  ;;  %v1117_v59 = vld [vmem:[#allocation8 + $0x90] sm:$0xf]  ;;  %v1054_v60 = vor.u32 %v1383_v58, %v1053_v57  ;;  %v1399_v61 = vld [vmem:[#allocation8 + $0x94] sm:$0xf0]  ;;  %v1382_v62 = vld [vmem:[#allocation8 + $0x14] sm:$0xf] }
  0x39   :  { %472 = vmatpush.bf16.msra.mxu2 %v1062_v47  ;;  %v1055_v63 = vld [vmem:[#allocation8 + $0x18] sm:$0xf0]  ;;  %v1118_v0 = vor.u32 %v1399_v61, %v1117_v59  ;;  %v1398_v2 = vld [vmem:[#allocation8 + $0x94] sm:$0xf]  ;;  %v1045_v5 = vld [vmem:[#allocation8] sm:$0xf] }
  0x3a   :  { %v1058_v1 = vor.u32 %v1382_v62, %v1055_v63  ;;  %v1119_v3 = vld [vmem:[#allocation8 + $0x98] sm:$0xf0]  ;;  %v1381_v6 = vld [vmem:[#allocation8 + $0x4] sm:$0xf0]  ;;  %v1109_v7 = vld [vmem:[#allocation8 + $0x80] sm:$0xf] }
  0x3b   :  { %242 = vmatpush.bf16.msra.mxu0 %v982_v10  ;;  %486 = vmatpush.bf16.msra.mxu3 %v1126_v51  ;;  %v1122_v4 = vor.u32 %v1398_v2, %v1119_v3  ;;  %v1046_v8 = vor.u32 %v1381_v6, %v1045_v5  ;;  %v1397_v9 = vld [vmem:[#allocation8 + $0x84] sm:$0xf0]  ;;  %v1380_v10 = vld [vmem:[#allocation8 + $0x4] sm:$0xf]  ;;  %v1111_v15 = vld [vmem:[#allocation8 + $0x88] sm:$0xf0] }
  0x3c   :  { %256 = vmatpush.bf16.msra.mxu1 %v986_v11  ;;  %v1047_v11 = vld [vmem:[#allocation8 + $0x8] sm:$0xf0]  ;;  %v1396_v14 = vld [vmem:[#allocation8 + $0x84] sm:$0xf]  ;;  %v1293_v17 = vld [vmem:[#allocation10 + $0xf0] sm:$0xf] }
  0x3d   :  { %473 = vmatpush.bf16.msra.mxu2 %v1054_v60  ;;  %v1443_v18 = vld [vmem:[#allocation10 + $0xf4] sm:$0xf0]  ;;  %v1295_v21 = vld [vmem:[#allocation10 + $0xf8] sm:$0xf0]  ;;  %v1285_v22 = vld [vmem:[#allocation10 + $0xe0] sm:$0xf] }
  0x3e   :  { %243 = vmatmul.bf16.vlgmr.msra.gmra.mxu0 %v1363_v16  ;;  %v1441_v23 = vld [vmem:[#allocation10 + $0xe4] sm:$0xf0]  ;;  %v1229_v27 = vld [vmem:[#allocation10 + $0x70] sm:$0xf]  ;;  %v1427_v29 = vld [vmem:[#allocation10 + $0x74] sm:$0xf0] }
  0x3f   :  { %495 = vmatpush.bf16.msrb.mxu0 %v1106_v12  ;;  %257 = vmatmul.bf16.vlgmr.msra.gmra.mxu1 %v1363_v16  ;;  %v1110_v12 = vor.u32 %v1397_v9, %v1109_v7  ;;  %v1114_v16 = vor.u32 %v1396_v14, %v1111_v15  ;;  %v1286_v28 = vor.u32 %v1441_v23, %v1285_v22  ;;  %v1426_v30 = vld [vmem:[#allocation10 + $0x74] sm:$0xf]  ;;  %v1277_v35 = vld [vmem:[#allocation10 + $0xd0] sm:$0xf]  ;;  %v1439_v36 = vld [vmem:[#allocation10 + $0xd4] sm:$0xf0] }
  0x40   :  { %509 = vmatpush.bf16.msrb.mxu1 %v1170_v13  ;;  %487 = vmatpush.bf16.msra.mxu3 %v1118_v0  ;;  %v1050_v13 = vor.u32 %v1380_v10, %v1047_v11  ;;  %v1230_v33 = vor.u32 %v1427_v29, %v1229_v27  ;;  %v1438_v37 = vld [vmem:[#allocation10 + $0xd4] sm:$0xf]  ;;  %v1279_v38 = vld [vmem:[#allocation10 + $0xd8] sm:$0xf0]  ;;  %v1221_v39 = vld [vmem:[#allocation10 + $0x60] sm:$0xf] }
  0x41   :  { %474 = vmatpush.bf16.msra.mxu2 %v1046_v8  ;;  %v1425_v40 = vld [vmem:[#allocation10 + $0x64] sm:$0xf0]  ;;  %v1424_v42 = vld [vmem:[#allocation10 + $0x64] sm:$0xf]  ;;  %v1223_v43 = vld [vmem:[#allocation10 + $0x68] sm:$0xf0]  ;;  %v1282_v46 = vor.u32 %v1438_v37, %v1279_v38 }
  0x42   :  { %v1226_v45 = vor.u32 %v1424_v42, %v1223_v43  ;;  %v1269_v47 = vld [vmem:[#allocation10 + $0xc0] sm:$0xf]  ;;  %v1437_v48 = vld [vmem:[#allocation10 + $0xc4] sm:$0xf0]  ;;  %v1436_v49 = vld [vmem:[#allocation10 + $0xc4] sm:$0xf] }
  0x43   :  { %496 = vmatpush.bf16.msrb.mxu0 %v1098_v19  ;;  %v1442_v19 = vld [vmem:[#allocation10 + $0xf4] sm:$0xf]  ;;  %v1271_v50 = vld [vmem:[#allocation10 + $0xc8] sm:$0xf0]  ;;  %v1270_v51 = vor.u32 %v1437_v48, %v1269_v47  ;;  %v143_v53 = vld [vmem:[#allocation7] sm:$0x3] }
  0x44   :  { %510 = vmatpush.bf16.msrb.mxu1 %v1162_v20  ;;  %488 = vmatpush.bf16.msra.mxu3 %v1110_v12  ;;  %v1294_v20 = vor.u32 %v1443_v18, %v1293_v17  ;;  %v1298_v24 = vor.u32 %v1442_v19, %v1295_v21  ;;  %v1274_v52 = vor.u32 %v1436_v49, %v1271_v50  ;;  %v146_v57 = vperm.slane %v143_v53, 1  ;;  %v1213_v6 = vld [vmem:[#allocation10 + $0x50] sm:$0xf]  ;;  %v1423_v7 = vld [vmem:[#allocation10 + $0x54] sm:$0xf0]  ;;  %s957_s22 = sshll.u32 %s1664_s1, 4  ;;  %s958_s22 = int_to_ptr.vmem [resolvable:$true] %s957_s22 }
  0x45   :  { %727 = vmatpush.bf16.msrb.mxu2 %v1230_v33  ;;  %v1422_v8 = vld [vmem:[#allocation10 + $0x54] sm:$0xf]  ;;  %v1214_v9 = vor.u32 %v1423_v7, %v1213_v6  ;;  %v1215_v10 = vld [vmem:[#allocation10 + $0x58] sm:$0xf0]  ;;  %v1261_v12 = vld [vmem:[#allocation10 + $0xb0] sm:$0xf] }
  0x46   :  { %v1218_v11 = vor.u32 %v1422_v8, %v1215_v10  ;;  %v1434_v14 = vld [vmem:[#allocation10 + $0xb4] sm:$0xf]  ;;  %v1205_v18 = vld [vmem:[#allocation10 + $0x40] sm:$0xf]  ;;  %v1421_v19 = vld [vmem:[#allocation10 + $0x44] sm:$0xf0] }
  0x47   :  { %497 = vmatpush.bf16.msrb.mxu0 %v1090_v25  ;;  %v1440_v25 = vld [vmem:[#allocation10 + $0xe4] sm:$0xf]  ;;  %v1206_v21 = vor.u32 %v1421_v19, %v1205_v18  ;;  %v1207_v22 = vld [vmem:[#allocation10 + $0x48] sm:$0xf0]  ;;  %v1431_v37 = vld [vmem:[#allocation10 + $0x94] sm:$0xf0] }
  0x48   :  { %511 = vmatpush.bf16.msrb.mxu1 %v1154_v26  ;;  %v1287_v26 = vld [vmem:[#allocation10 + $0xe8] sm:$0xf0]  ;;  %741 = vmatpush.bf16.msrb.mxu3 %v1294_v20  ;;  %v1420_v20 = vld [vmem:[#allocation10 + $0x44] sm:$0xf]  ;;  %v1430_v38 = vld [vmem:[#allocation10 + $0x94] sm:$0xf] }
  0x49   :  { %v1210_v23 = vor.u32 %v1420_v20, %v1207_v22  ;;  %v1189_v42 = vld [vmem:[#allocation10 + $0x20] sm:$0xf]  ;;  %v1417_v43 = vld [vmem:[#allocation10 + $0x24] sm:$0xf0]  ;;  %v1428_v50 = vld [vmem:[#allocation10 + $0x84] sm:$0xf] }
  0x4a   :  { %v1237_v48 = vld [vmem:[#allocation10 + $0x80] sm:$0xf]  ;;  %v1429_v49 = vld [vmem:[#allocation10 + $0x84] sm:$0xf0]  ;;  %s959_s24 = sshll.u32 %s1766_s9, 4  ;;  %s960_s24 = int_to_ptr.hbm [resolvable:$true] %s959_s24 }
  0x4b   :  { %498 = vmatpush.bf16.msrb.mxu0 %v1082_v31  ;;  %v1231_v31 = vld [vmem:[#allocation10 + $0x78] sm:$0xf0] }
  0x4c   :  { %512 = vmatpush.bf16.msrb.mxu1 %v1146_v32  ;;  %v1290_v32 = vor.u32 %v1440_v25, %v1287_v26  ;;  %v1234_v34 = vor.u32 %v1426_v30, %v1231_v31  ;;  %742 = vmatpush.bf16.msrb.mxu3 %v1286_v28  ;;  %v1433_v25 = vld [vmem:[#allocation10 + $0xa4] sm:$0xf0]  ;;  %v1432_v26 = vld [vmem:[#allocation10 + $0xa4] sm:$0xf]  ;;  %v1255_v28 = vld [vmem:[#allocation10 + $0xa8] sm:$0xf0] }
  0x4d   :  { %v1258_v29 = vor.u32 %v1432_v26, %v1255_v28  ;;  %v1197_v30 = vld [vmem:[#allocation10 + $0x30] sm:$0xf]  ;;  %v1419_v31 = vld [vmem:[#allocation10 + $0x34] sm:$0xf0] }
  0x4e   :  { %v1198_v33 = vor.u32 %v1419_v31, %v1197_v30  ;;  %v1457_v30 = vld [vmem:[#allocation11 + $0x68] sm:$0xff]  ;;  %v1450_v31 = vld [vmem:[#allocation11 + $0x30] sm:$0xff] }
  0x4f   :  { %499 = vmatpush.bf16.msrb.mxu0 %v1074_v41  ;;  %v1222_v41 = vor.u32 %v1425_v40, %v1221_v39  ;;  %v1247_v40 = vld [vmem:[#allocation10 + $0x98] sm:$0xf0] }
  0x50   :  { %513 = vmatpush.bf16.msrb.mxu1 %v1138_v44  ;;  %v1278_v44 = vor.u32 %v1439_v36, %v1277_v35  ;;  %v1245_v36 = vld [vmem:[#allocation10 + $0x90] sm:$0xf] }
  0x51   :  { %728 = vmatpush.bf16.msrb.mxu2 %v1222_v41  ;;  %v1246_v39 = vor.u32 %v1431_v37, %v1245_v36  ;;  %v1250_v41 = vor.u32 %v1430_v38, %v1247_v40  ;;  %v1454_v36 = vld [vmem:[#allocation11 + $0x50] sm:$0xff]  ;;  %v1447_v37 = vld [vmem:[#allocation11 + $0x18] sm:$0xff]  ;;  %v1453_v38 = vld [vmem:[#allocation11 + $0x48] sm:$0xff] }
  0x52   :  { %743 = vmatpush.bf16.msrb.mxu3 %v1278_v44  ;;  %v1416_v44 = vld [vmem:[#allocation10 + $0x24] sm:$0xf] }
  0x53   :  { %500 = vmatpush.bf16.msrb.mxu0 %v1066_v55  ;;  %v1452_v40 = vld [vmem:[#allocation11 + $0x40] sm:$0xff] }
  0x54   :  { %514 = vmatpush.bf16.msrb.mxu1 %v1130_v56  ;;  %v145_v56 = vperm.slane %v143_v53, 0 }
  0x55   :  { %729 = vmatpush.bf16.msrb.mxu2 %v1214_v9 }
  0x56   :  { %744 = vmatpush.bf16.msrb.mxu3 %v1270_v51  ;;  %v1238_v51 = vor.u32 %v1429_v49, %v1237_v48 }
  0x57   :  { %501 = vmatpush.bf16.msrb.mxu0 %v1058_v1 }
  0x58   :  { %515 = vmatpush.bf16.msrb.mxu1 %v1122_v4 }
  0x59   :  { %730 = vmatpush.bf16.msrb.mxu2 %v1206_v21 }
  0x5b   :  { %502 = vmatpush.bf16.msrb.mxu0 %v1050_v13  ;;  %v1435_v13 = vld [vmem:[#allocation10 + $0xb4] sm:$0xf0] }
  0x5c   :  { %516 = vmatpush.bf16.msrb.mxu1 %v1114_v16  ;;  %v1262_v15 = vor.u32 %v1435_v13, %v1261_v12  ;;  %v1263_v16 = vld [vmem:[#allocation10 + $0xb8] sm:$0xf0] }
  0x5d   :  { %v1266_v17 = vor.u32 %v1434_v14, %v1263_v16  ;;  %731 = vmatpush.bf16.msrb.mxu2 %v1198_v33  ;;  %v1449_v33 = vld [vmem:[#allocation11 + $0x28] sm:$0xff] }
  0x5e   :  { %745 = vmatpush.bf16.msrb.mxu3 %v1262_v15 }
  0x5f   :  { %755 = vmatpush.bf16.msra.mxu0 %v1234_v34  ;;  %v1199_v34 = vld [vmem:[#allocation10 + $0x38] sm:$0xf0] }
  0x60   :  { %769 = vmatpush.bf16.msra.mxu1 %v1298_v24  ;;  %v1253_v24 = vld [vmem:[#allocation10 + $0xa0] sm:$0xf] }
  0x61   :  { %v1254_v27 = vor.u32 %v1433_v25, %v1253_v24 }
  0x63   :  { %756 = vmatpush.bf16.msra.mxu0 %v1226_v45  ;;  %746 = vmatpush.bf16.msrb.mxu3 %v1254_v27  ;;  %v1190_v45 = vor.u32 %v1417_v43, %v1189_v42  ;;  %v1444_v42 = vld [vmem:[#allocation11] sm:$0xff]  ;;  %v561_v43 = vld [vmem:[%s1763_s6] sm:$0x3] }
  0x64   :  { %770 = vmatpush.bf16.msra.mxu1 %v1290_v32  ;;  %v1418_v32 = vld [vmem:[#allocation10 + $0x34] sm:$0xf] }
  0x65   :  { %v1202_v35 = vor.u32 %v1418_v32, %v1199_v34  ;;  %732 = vmatpush.bf16.msrb.mxu2 %v1190_v45  ;;  %v1456_v32 = vld [vmem:[#allocation11 + $0x60] sm:$0xff]  ;;  %v1455_v34 = vld [vmem:[#allocation11 + $0x58] sm:$0xff] }
  0x67   :  { %757 = vmatpush.bf16.msra.mxu0 %v1218_v11  ;;  %747 = vmatpush.bf16.msrb.mxu3 %v1246_v39  ;;  %v1446_v39 = vld [vmem:[#allocation11 + $0x10] sm:$0xff] }
  0x68   :  { %771 = vmatpush.bf16.msra.mxu1 %v1282_v46  ;;  %v1191_v46 = vld [vmem:[#allocation10 + $0x28] sm:$0xf0] }
  0x69   :  { %v1194_v47 = vor.u32 %v1416_v44, %v1191_v46  ;;  %v564_v46 = vperm.slane %v561_v43, 1 }
  0x6b   :  { %758 = vmatpush.bf16.msra.mxu0 %v1210_v23  ;;  %748 = vmatpush.bf16.msrb.mxu3 %v1238_v51 }
  0x6c   :  { %772 = vmatpush.bf16.msra.mxu1 %v1274_v52  ;;  %v1239_v52 = vld [vmem:[#allocation10 + $0x88] sm:$0xf0] }
  0x6d   :  { %v1242_v53 = vor.u32 %v1428_v50, %v1239_v52  ;;  %v563_v50 = vperm.slane %v561_v43, 0 }
  0x6f   :  { %759 = vmatpush.bf16.msra.mxu0 %v1202_v35  ;;  %v1448_v35 = vld [vmem:[#allocation11 + $0x20] sm:$0xff] }
  0x70   :  { %773 = vmatpush.bf16.msra.mxu1 %v1266_v17 }
  0x73   :  { %760 = vmatpush.bf16.msra.mxu0 %v1194_v47 }
  0x74   :  { %774 = vmatpush.bf16.msra.mxu1 %v1258_v29 }
  0x78   :  { %775 = vmatpush.bf16.msra.mxu1 %v1250_v41  ;;  %v1445_v41 = vld [vmem:[#allocation11 + $0x8] sm:$0xff] }
  0x7c   :  { %776 = vmatpush.bf16.msra.mxu1 %v1242_v53 }
  0xbb   :  { %v244_v54 = vpop.f32.mrf.mxu0 }
  0xbc   :  { %v258_v55 = vpop.f32.mrf.mxu1  ;;  %v245_v58 = vadd.f32 %v244_v54, %v145_v56  ;;  %v1181_v54 = vld [vmem:[#allocation10 + $0x10] sm:$0xf] }
  0xbd   :  { %v259_v59 = vadd.f32 %v258_v55, %v146_v57  ;;  %v1415_v55 = vld [vmem:[#allocation10 + $0x14] sm:$0xf0] }
  0xbe   :  { %v263_v0 = vmax.f32 %v245_v58, 0.0  ;;  %v1183_v58 = vld [vmem:[#allocation10 + $0x18] sm:$0xf0] }
  0xbf   :  { %v264_v2 = vmax.f32 %v259_v59, 0.0 }
  0xc3   :  { %v246_v60 = vpop.f32.mrf.mxu0 }
  0xc4   :  { %v247_v61 = vadd.f32 %v246_v60, %v145_v56  ;;  %v260_v62 = vpop.f32.mrf.mxu1  ;;  %v1414_v56 = vld [vmem:[#allocation10 + $0x14] sm:$0xf]  ;;  %v1173_v60 = vld [vmem:[#allocation10] sm:$0xf] }
  0xc5   :  { %v261_v63 = vadd.f32 %v260_v62, %v146_v57  ;;  %v1182_v57 = vor.u32 %v1415_v55, %v1181_v54  ;;  %v1186_v59 = vor.u32 %v1414_v56, %v1183_v58  ;;  %v1412_v62 = vld [vmem:[#allocation10 + $0x4] sm:$0xf] }
  0xc6   :  { %v265_v1 = vmax.f32 %v247_v61, 0.0  ;;  %v1413_v61 = vld [vmem:[#allocation10 + $0x4] sm:$0xf0] }
  0xc7   :  { %v266_v3 = vmax.f32 %v261_v63, 0.0  ;;  %733 = vmatpush.bf16.msrb.mxu2 %v1182_v57  ;;  %761 = vmatpush.bf16.msra.mxu0 %v1186_v59  ;;  %v1174_v63 = vor.u32 %v1413_v61, %v1173_v60 }
  0xc8   :  { %v267_v4 = vpack.c.bf16 %v265_v1, %v263_v0  ;;  %v1175_v0 = vld [vmem:[#allocation10 + $0x8] sm:$0xf0] }
  0xc9   :  { %v268_v5 = vpack.c.bf16 %v266_v3, %v264_v2  ;;  %v1178_v1 = vor.u32 %v1412_v62, %v1175_v0  ;;  %v1459_v2 = vld [vmem:[#allocation11 + $0x78] sm:$0xff] }
  0xca   :  { %475 = vmatmul.bf16.vlgmr.msra.gmra.mxu2 %v267_v4  ;;  %503 = vmatmul.bf16.vlgmr.msrb.gmra.mxu0 %v267_v4  ;;  %v1451_v3 = vld [vmem:[#allocation11 + $0x38] sm:$0xff]  ;;  %v1458_v4 = vld [vmem:[#allocation11 + $0x70] sm:$0xff] }
  0xcb   :  { %489 = vmatmul.bf16.vlgmr.msra.gmra.mxu3 %v268_v5  ;;  %517 = vmatmul.bf16.vlgmr.msrb.gmra.mxu1 %v268_v5  ;;  %v301_v5 = vld [vmem:[%s1761_s4] sm:$0x3] }
  0xcc   :  { %734 = vmatpush.bf16.msrb.mxu2 %v1174_v63  ;;  %762 = vmatpush.bf16.msra.mxu0 %v1178_v1  ;;  %v304_v7 = vperm.slane %v301_v5, 1  ;;  %v303_v11 = vperm.slane %v301_v5, 0 }
  0xcd   :  { %935 = vmatpush.bf16.msra.mxu3 %v1459_v2 }
  0xd0   :  { %921 = vmatpush.bf16.msra.mxu2 %v1451_v3 }
  0xd1   :  { %936 = vmatpush.bf16.msra.mxu3 %v1458_v4  ;;  %v1471_v4 = vld [vmem:[%s1765_s8] ss:$0 sm:$0xff] }
  0xd4   :  { %922 = vmatpush.bf16.msra.mxu2 %v1450_v31 }
  0xd5   :  { %937 = vmatpush.bf16.msra.mxu3 %v1457_v30 }
  0xd8   :  { %923 = vmatpush.bf16.msra.mxu2 %v1449_v33 }
  0xd9   :  { %938 = vmatpush.bf16.msra.mxu3 %v1456_v32 }
  0xdc   :  { %924 = vmatpush.bf16.msra.mxu2 %v1448_v35 }
  0xdd   :  { %939 = vmatpush.bf16.msra.mxu3 %v1455_v34 }
  0xe0   :  { %925 = vmatpush.bf16.msra.mxu2 %v1447_v37 }
  0xe1   :  { %940 = vmatpush.bf16.msra.mxu3 %v1454_v36 }
  0xe4   :  { %926 = vmatpush.bf16.msra.mxu2 %v1446_v39 }
  0xe5   :  { %941 = vmatpush.bf16.msra.mxu3 %v1453_v38 }
  0xe8   :  { %927 = vmatpush.bf16.msra.mxu2 %v1445_v41 }
  0xe9   :  { %942 = vmatpush.bf16.msra.mxu3 %v1452_v40 }
  0xec   :  { %928 = vmatpush.bf16.msra.mxu2 %v1444_v42 }
 0x147   :  { %v504_v6 = vpop.f32.mrf.mxu0 }
 0x148   :  { %v518_v8 = vpop.f32.mrf.mxu1  ;;  %v505_v9 = vadd.f32 %v504_v6, %v304_v7 }
 0x14a   :  { %v519_v14 = vadd.f32 %v518_v8, %v505_v9 }
 0x14c   :  { %v524_v19 = vmax.f32 %v519_v14, 0.0 }
 0x14d   :  { %v476_v10 = vpop.f32.mrf.mxu2 }
 0x14e   :  { %v490_v12 = vpop.f32.mrf.mxu3  ;;  %v477_v17 = vadd.f32 %v476_v10, %v303_v11 }
 0x14f   :  { %v506_v13 = vpop.f32.mrf.mxu0 }
 0x150   :  { %v507_v15 = vadd.f32 %v506_v13, %v304_v7  ;;  %v520_v16 = vpop.f32.mrf.mxu1  ;;  %v491_v22 = vadd.f32 %v490_v12, %v477_v17 }
 0x152   :  { %v521_v18 = vadd.f32 %v520_v16, %v507_v15  ;;  %v523_v27 = vmax.f32 %v491_v22, 0.0 }
 0x154   :  { %v526_v20 = vmax.f32 %v521_v18, 0.0 }
 0x155   :  { %v478_v21 = vpop.f32.mrf.mxu2 }
 0x156   :  { %v528_v23 = vpack.c.bf16 %v526_v20, %v524_v19  ;;  %v479_v24 = vadd.f32 %v478_v21, %v303_v11  ;;  %v492_v25 = vpop.f32.mrf.mxu3 }
 0x158   :  { %v493_v26 = vadd.f32 %v492_v25, %v479_v24  ;;  %749 = vmatmul.bf16.vlgmr.msrb.gmra.mxu3 %v528_v23  ;;  %777 = vmatmul.bf16.vlgmr.msra.gmra.mxu1 %v528_v23 }
 0x15a   :  { %v525_v28 = vmax.f32 %v493_v26, 0.0 }
 0x15c   :  { %v527_v29 = vpack.c.bf16 %v525_v28, %v523_v27 }
 0x15e   :  { %735 = vmatmul.bf16.vlgmr.msrb.gmra.mxu2 %v527_v29  ;;  %763 = vmatmul.bf16.vlgmr.msra.gmra.mxu0 %v527_v29 }
 0x1d5   :  { %v778_v44 = vpop.f32.mrf.mxu1 }
 0x1db   :  { %v764_v45 = vpop.f32.mrf.mxu0  ;;  %v750_v48 = vpop.f32.mrf.mxu3 }
 0x1dc   :  { %v765_v47 = vadd.f32 %v764_v45, %v564_v46 }
 0x1dd   :  { %v780_v54 = vpop.f32.mrf.mxu1 }
 0x1de   :  { %v779_v52 = vadd.f32 %v778_v44, %v765_v47 }
 0x1e0   :  { %v784_v57 = vmax.f32 %v779_v52, 0.0 }
 0x1e1   :  { %v736_v49 = vpop.f32.mrf.mxu2 }
 0x1e2   :  { %v737_v55 = vadd.f32 %v736_v49, %v563_v50 }
 0x1e3   :  { %v766_v51 = vpop.f32.mrf.mxu0  ;;  %v752_v63 = vpop.f32.mrf.mxu3 }
 0x1e4   :  { %v767_v53 = vadd.f32 %v766_v51, %v564_v46  ;;  %v751_v60 = vadd.f32 %v750_v48, %v737_v55 }
 0x1e6   :  { %v781_v56 = vadd.f32 %v780_v54, %v767_v53  ;;  %v783_v1 = vmax.f32 %v751_v60, 0.0 }
 0x1e8   :  { %v786_v58 = vmax.f32 %v781_v56, 0.0 }
 0x1e9   :  { %v738_v59 = vpop.f32.mrf.mxu2 }
 0x1ea   :  { %v788_v61 = vpack.c.bf16 %v786_v58, %v784_v57  ;;  %v739_v62 = vadd.f32 %v738_v59, %v563_v50 }
 0x1ec   :  { %v753_v0 = vadd.f32 %v752_v63, %v739_v62  ;;  %943 = vmatmul.bf16.vlgmr.msra.gmra.mxu3 %v788_v61 }
 0x1ee   :  { %v785_v2 = vmax.f32 %v753_v0, 0.0 }
 0x1f0   :  { %v787_v3 = vpack.c.bf16 %v785_v2, %v783_v1 }
 0x1f2   :  { %929 = vmatmul.bf16.vlgmr.msra.gmra.mxu2 %v787_v3 }
 0x26f   :  { %v944_v5 = vpop.f32.mrf.mxu3 }
 0x275   :  { %v930_v6 = vpop.f32.mrf.mxu2 }
 0x276   :  { %v931_v7 = vadd.f32 %v1471_v4, %v930_v6 }
 0x277   :  { %v946_v11 = vpop.f32.mrf.mxu3 }
 0x278   :  { %v945_v8 = vadd.f32 %v944_v5, %v931_v7 }
 0x27a   :  { %1472 = vtanh.f32 %v945_v8 }
 0x27d   :  { %v932_v9 = vpop.f32.mrf.mxu2 }
 0x27e   :  { %v933_v10 = vadd.f32 %v1471_v4, %v932_v9 }
 0x280   :  { %v1473_v12 = vpop.eup %1472  ;;  %v947_v13 = vadd.f32 %v946_v11, %v933_v10 }
 0x281   :  { %951 = vst [vmem:[#allocation13] sm:$0xff] %v1473_v12 }
 0x282   :  { %1474 = vtanh.f32 %v947_v13 }
 0x288   :  { %v1475_v14 = vpop.eup %1474 }
 0x289   :  { %952 = vst [vmem:[#allocation13 + $0x8] sm:$0xff] %v1475_v14 }
 0x28a   :  { %965 = dma.vmem_to_hbm [thread:$0]  %s958_s22, 256, %s960_s24, [#allocation4], %s1655_s17, %s1655_s17, %s1656_s18  }
 0x28b   :  { %1652 = dma.done.wait [#allocation4], 256  }
 0x28c   :  { %1653 = vsyncadd [#allocation4], 4294967040 }
 0x28d   :  { %970 = vsyncpa [#allocation3], 1 }
 0x28e   :  { %971 = vsyncpa [#allocation6], 1 }
 0x28f   :  { %972 = vsyncpa [#allocation9], 1 }
 0x290   :  { %973 = vsyncpa [#allocation12], 1 }
 0x291   :  { %974 = vsyncpa [#allocation4], 1 }

</bundles_post_ra>
